<compile_context>
chip_gen: v7x
topology: tpu7x:2x2x1
jax: 0.10.0
libtpu: 0.0.40
codegen_flags: <defaults>
</compile_context>

<pallas_src>
import functools

import jax
import jax.numpy as jnp
from jax.experimental import pallas as pl
from jax.experimental.pallas import tpu as pltpu


def _lc_kernel(has_bias, *refs):
    # Layout (lane-dense on batch):
    #   x_ref : (C_in,  S, TN)
    #   w_ref : (C_out, C_in, S)
    #   b_ref : (C_out, S)          (only when has_bias)
    #   o_ref : (C_out, S, TN)
    if has_bias:
        x_ref, w_ref, b_ref, o_ref = refs
    else:
        x_ref, w_ref, o_ref = refs
        b_ref = None

    c_in = x_ref.shape[0]

    # Weight block is small and grid-invariant: load it once, in f32.
    w = w_ref[...].astype(jnp.float32)            # (C_out, C_in, S)

    # Accumulate over in_channels; live set is a single (C_out, S, TN) tile.
    # Per-channel x loads stay inside the loop to keep vreg pressure low.
    acc = None
    for i in range(c_in):                         # small, static unroll
        xi = x_ref[i].astype(jnp.float32)         # (S, TN)   — full-lane vregs
        wi = w[:, i, :]                           # (C_out, S)
        term = wi[:, :, None] * xi[None, :, :]    # (C_out, S, TN)
        acc = term if acc is None else acc + term

    if b_ref is not None:
        acc = acc + b_ref[...].astype(jnp.float32)[:, :, None]

    o_ref[...] = acc.astype(o_ref.dtype)


def locally_connected(x, weight, bias=None, *, tn=512):
    """LocallyConnected forward.

    x:      (N, C_in, S)
    weight: (C_out, C_in, S) or (1, C_out, C_in, S)
    bias:   None, (C_out, S) or (1, C_out, S)
    returns (N, C_out, S)   (squeezed to (N, S) if C_out == 1, like PyTorch)

    tn: batch-tile width (lanes).  Default 512 keeps the double-buffered
        x/out tiles to a few MiB for typical diabnet channel/spatial sizes;
        halve it for very large C_in*S on v7x (64 MiB VMEM per TC).
    """
    if weight.ndim == 4:          # (1, C_out, C_in, S) -> (C_out, C_in, S)
        weight = weight[0]
    if bias is not None and bias.ndim == 3:
        bias = bias[0]

    N, C_in, S = x.shape
    C_out = weight.shape[0]
    has_bias = bias is not None
    out_dtype = jnp.result_type(x.dtype, weight.dtype)

    # --- lane-dense layout: batch on the lane axis, padded to a multiple of TN
    TN = min(int(tn), int(pl.cdiv(N, 128)) * 128)   # multiple of 128
    N_pad = int(pl.cdiv(N, TN)) * TN

    xt = jnp.transpose(x, (1, 2, 0))                # (C_in, S, N)
    if N_pad != N:
        xt = jnp.pad(xt, ((0, 0), (0, 0), (0, N_pad - N)))

    grid = (N_pad // TN,)

    in_specs = [
        pl.BlockSpec((C_in, S, TN), lambda n: (0, 0, n)),
        # Weight/bias use a constant index_map -> fetched once, resident.
        pl.BlockSpec((C_out, C_in, S), lambda n: (0, 0, 0)),
    ]
    operands = [xt, weight]
    if has_bias:
        in_specs.append(pl.BlockSpec((C_out, S), lambda n: (0, 0)))
        operands.append(bias)

    out_t = pl.pallas_call(
        functools.partial(_lc_kernel, has_bias),
        out_shape=jax.ShapeDtypeStruct((C_out, S, N_pad), out_dtype),
        grid_spec=pltpu.PrefetchScalarGridSpec(
            num_scalar_prefetch=0,
            grid=grid,
            in_specs=in_specs,
            out_specs=pl.BlockSpec((C_out, S, TN), lambda n: (0, 0, n)),
        ),
        compiler_params=pltpu.CompilerParams(
            dimension_semantics=("parallel",),
        ),
    )(*operands)                                    # (C_out, S, N_pad)

    out = jnp.transpose(out_t[:, :, :N], (2, 0, 1))  # (N, C_out, S)
    if C_out == 1:                                   # mirror torch .squeeze(1)
        out = out[:, 0, :]
    return out


if __name__ == "__main__":
    # Small shapes consistent with the module's forward.
    N, C_in, C_out, S = 2, 4, 8, 16

    key = jax.random.PRNGKey(0)
    kx, kw, kb = jax.random.split(key, 3)

    x = jax.random.normal(kx, (N, C_in, S), dtype=jnp.float32)
    # Parameters as in the module (torch.randn analogue), PyTorch shapes.
    weight = jax.random.normal(kw, (1, C_out, C_in, S), dtype=jnp.float32)
    bias = jax.random.normal(kb, (1, C_out, S), dtype=jnp.float32)

    out = locally_connected(x, weight, bias)
    out = jax.block_until_ready(out)

    # Pure-JAX reference of the PyTorch forward.
    ref = jnp.sum(x[:, None, :, :] * weight, axis=2) + bias
    assert out.shape == (N, C_out, S), out.shape
    assert jnp.allclose(out, ref, atol=1e-5, rtol=1e-5), "mismatch vs reference"

    print("KERNEL_OK")
</pallas_src>

<mosaic_0001>
module attributes {stable_mosaic.version = 11 : i64} {
  func.func @_lc_kernel(%arg0: i32, %arg1: memref<4x16x128xf32, #tpu.memory_space<vmem>>, %arg2: memref<8x4x16xf32, #tpu.memory_space<vmem>>, %arg3: memref<8x16xf32, #tpu.memory_space<vmem>>, %arg4: memref<8x16x128xf32, #tpu.memory_space<vmem>>) attributes {dimension_semantics = [#tpu.dimension_semantics<parallel>], iteration_bounds = array<i64: 1>, scalar_prefetch = 0 : i64, scratch_operands = 0 : i64, tpu.core_type = #tpu.core_type<tc>, window_params = [{transform_indices = @transform_0, window_bounds = array<i64: 4, 16, 128>}, {pipeline_mode = #tpu.pipeline_mode<synchronous>, transform_indices = @transform_1, window_bounds = array<i64: 8, 4, 16>}, {pipeline_mode = #tpu.pipeline_mode<synchronous>, transform_indices = @transform_2, window_bounds = array<i64: 8, 16>}, {transform_indices = @transform_3, window_bounds = array<i64: 8, 16, 128>}]} {
    %c0 = arith.constant 0 : index
    %c0_0 = arith.constant 0 : index
    %c0_1 = arith.constant 0 : index
    %0 = vector.load %arg2[%c0, %c0_0, %c0_1] : memref<8x4x16xf32, #tpu.memory_space<vmem>>, vector<8x4x16xf32>
    %c0_2 = arith.constant 0 : index
    %c0_3 = arith.constant 0 : index
    %c0_4 = arith.constant 0 : index
    %1 = vector.load %arg1[%c0_2, %c0_3, %c0_4] : memref<4x16x128xf32, #tpu.memory_space<vmem>>, vector<1x16x128xf32>
    %2 = vector.shape_cast %1 : vector<1x16x128xf32> to vector<16x128xf32>
    %3 = vector.extract_strided_slice %0 {offsets = [0, 0, 0], sizes = [8, 1, 16], strides = [1, 1, 1]} : vector<8x4x16xf32> to vector<8x1x16xf32>
    %4 = vector.shape_cast %3 : vector<8x1x16xf32> to vector<8x16xf32>
    %5 = vector.shape_cast %4 : vector<8x16xf32> to vector<8x16x1xf32>
    %6 = vector.shape_cast %2 : vector<16x128xf32> to vector<1x16x128xf32>
    %7 = vector.broadcast %5 : vector<8x16x1xf32> to vector<8x16x128xf32>
    %8 = vector.broadcast %6 : vector<1x16x128xf32> to vector<8x16x128xf32>
    %9 = arith.mulf %7, %8 : vector<8x16x128xf32>
    %c1 = arith.constant 1 : index
    %c0_5 = arith.constant 0 : index
    %c0_6 = arith.constant 0 : index
    %10 = vector.load %arg1[%c1, %c0_5, %c0_6] : memref<4x16x128xf32, #tpu.memory_space<vmem>>, vector<1x16x128xf32>
    %11 = vector.shape_cast %10 : vector<1x16x128xf32> to vector<16x128xf32>
    %12 = vector.extract_strided_slice %0 {offsets = [0, 1, 0], sizes = [8, 1, 16], strides = [1, 1, 1]} : vector<8x4x16xf32> to vector<8x1x16xf32>
    %13 = vector.shape_cast %12 : vector<8x1x16xf32> to vector<8x16xf32>
    %14 = vector.shape_cast %13 : vector<8x16xf32> to vector<8x16x1xf32>
    %15 = vector.shape_cast %11 : vector<16x128xf32> to vector<1x16x128xf32>
    %16 = vector.broadcast %14 : vector<8x16x1xf32> to vector<8x16x128xf32>
    %17 = vector.broadcast %15 : vector<1x16x128xf32> to vector<8x16x128xf32>
    %18 = arith.mulf %16, %17 : vector<8x16x128xf32>
    %19 = arith.addf %9, %18 : vector<8x16x128xf32>
    %c2 = arith.constant 2 : index
    %c0_7 = arith.constant 0 : index
    %c0_8 = arith.constant 0 : index
    %20 = vector.load %arg1[%c2, %c0_7, %c0_8] : memref<4x16x128xf32, #tpu.memory_space<vmem>>, vector<1x16x128xf32>
    %21 = vector.shape_cast %20 : vector<1x16x128xf32> to vector<16x128xf32>
    %22 = vector.extract_strided_slice %0 {offsets = [0, 2, 0], sizes = [8, 1, 16], strides = [1, 1, 1]} : vector<8x4x16xf32> to vector<8x1x16xf32>
    %23 = vector.shape_cast %22 : vector<8x1x16xf32> to vector<8x16xf32>
    %24 = vector.shape_cast %23 : vector<8x16xf32> to vector<8x16x1xf32>
    %25 = vector.shape_cast %21 : vector<16x128xf32> to vector<1x16x128xf32>
    %26 = vector.broadcast %24 : vector<8x16x1xf32> to vector<8x16x128xf32>
    %27 = vector.broadcast %25 : vector<1x16x128xf32> to vector<8x16x128xf32>
    %28 = arith.mulf %26, %27 : vector<8x16x128xf32>
    %29 = arith.addf %19, %28 : vector<8x16x128xf32>
    %c3 = arith.constant 3 : index
    %c0_9 = arith.constant 0 : index
    %c0_10 = arith.constant 0 : index
    %30 = vector.load %arg1[%c3, %c0_9, %c0_10] : memref<4x16x128xf32, #tpu.memory_space<vmem>>, vector<1x16x128xf32>
    %31 = vector.shape_cast %30 : vector<1x16x128xf32> to vector<16x128xf32>
    %32 = vector.extract_strided_slice %0 {offsets = [0, 3, 0], sizes = [8, 1, 16], strides = [1, 1, 1]} : vector<8x4x16xf32> to vector<8x1x16xf32>
    %33 = vector.shape_cast %32 : vector<8x1x16xf32> to vector<8x16xf32>
    %34 = vector.shape_cast %33 : vector<8x16xf32> to vector<8x16x1xf32>
    %35 = vector.shape_cast %31 : vector<16x128xf32> to vector<1x16x128xf32>
    %36 = vector.broadcast %34 : vector<8x16x1xf32> to vector<8x16x128xf32>
    %37 = vector.broadcast %35 : vector<1x16x128xf32> to vector<8x16x128xf32>
    %38 = arith.mulf %36, %37 : vector<8x16x128xf32>
    %39 = arith.addf %29, %38 : vector<8x16x128xf32>
    %c0_11 = arith.constant 0 : index
    %c0_12 = arith.constant 0 : index
    %40 = vector.load %arg3[%c0_11, %c0_12] : memref<8x16xf32, #tpu.memory_space<vmem>>, vector<8x16xf32>
    %41 = vector.shape_cast %40 : vector<8x16xf32> to vector<8x16x1xf32>
    %42 = vector.broadcast %41 : vector<8x16x1xf32> to vector<8x16x128xf32>
    %43 = arith.addf %39, %42 : vector<8x16x128xf32>
    %c0_13 = arith.constant 0 : index
    %c0_14 = arith.constant 0 : index
    %c0_15 = arith.constant 0 : index
    %44 = vector.load %arg4[%c0_13, %c0_14, %c0_15] : memref<8x16x128xf32, #tpu.memory_space<vmem>>, vector<8x16x128xf32>
    tpu.vector_store %arg4[%c0_13, %c0_14, %c0_15], %43 {strides = array<i32>} : memref<8x16x128xf32, #tpu.memory_space<vmem>>, vector<8x16x128xf32>,
    return
  }
  func.func @transform_0(%arg0: i32) -> (i32, i32, i32) {
    %c0_i32 = arith.constant 0 : i32
    %c0_i32_0 = arith.constant 0 : i32
    %c0_i32_1 = arith.constant 0 : i32
    return %c0_i32, %c0_i32_0, %arg0 : i32, i32, i32
  }
  func.func @transform_1(%arg0: i32) -> (i32, i32, i32) {
    %c0_i32 = arith.constant 0 : i32
    %c0_i32_0 = arith.constant 0 : i32
    %c0_i32_1 = arith.constant 0 : i32
    %c0_i32_2 = arith.constant 0 : i32
    return %c0_i32, %c0_i32_0, %c0_i32_1 : i32, i32, i32
  }
  func.func @transform_2(%arg0: i32) -> (i32, i32) {
    %c0_i32 = arith.constant 0 : i32
    %c0_i32_0 = arith.constant 0 : i32
    %c0_i32_1 = arith.constant 0 : i32
    return %c0_i32, %c0_i32_0 : i32, i32
  }
  func.func @transform_3(%arg0: i32) -> (i32, i32, i32) {
    %c0_i32 = arith.constant 0 : i32
    %c0_i32_0 = arith.constant 0 : i32
    %c0_i32_1 = arith.constant 0 : i32
    return %c0_i32, %c0_i32_0, %arg0 : i32, i32, i32
  }
}

</mosaic_0001>

<bundles_post_ra>
// kernel: tpu_custom_call.1
= control target key start
LH: loop header
LB: loop body
LE: loop exit
PB: predicated region body
PF: predicated region fallthrough
CT: control target
= control target key end

     0   :  { %8 = vsyncpa [#allocation3], 0  ;;  %s1170_s0 = inlined_call_operand.hbm [shape: f32[4,16,128], index: 0, kind: input, shape index: {}]   ;;  %s1171_s1 = inlined_call_operand.hbm [shape: f32[8,4,16], index: 1, kind: input, shape index: {}]   ;;  %s1172_s2 = inlined_call_operand.hbm [shape: f32[8,16], index: 2, kind: input, shape index: {}]   ;;  %s1173_s3 = inlined_call_operand.hbm [shape: f32[8,16,128], index: 3, kind: output, shape index: {}]  }
   0x1   :  { %9 = vsyncpa [#allocation6], 0 }
   0x2   :  { %10 = vsyncpa [#allocation4], 0  ;;  %s778_s12 = smov [#allocation5]   ;;  %s684_s16 = scalar_lea.hbm %s1171_s1, 512 }
   0x3   :  { %s28_s13 = sshll.u32 %s778_s12, 4  ;;  %p685_p0 = scmp.ne.s32.totalorder %s1171_s1, %s684_s16  ;;  %s29_s13 = int_to_ptr.vmem [resolvable:$true] %s28_s13 }
   0x4   :  { %p688_p1 = scmp.lt.u32.totalorder %s684_s16, %s1171_s1 }
   0x6   :  { %p690_p2 = pnand %p688_p1, %p685_p0 }
   0x8   :  { %693 = shalt.err (!%p690_p2)
}
   0x9   :  { %s694_s21 = scalar_lea.vmem %s29_s13, 512  ;;  %p699_p4 = scmp.lt.s32.totalorder %s29_s13, %s29_s13 }
   0xa   :  { %p695_p3 = scmp.ne.s32.totalorder %s29_s13, %s694_s21  ;;  %p700_p5 = scmp.lt.s32.totalorder %s694_s21, %s694_s21 }
   0xc   :  { %p701_p6 = por %p700_p5, %p699_p4 }
   0xe   :  { %p702_p7 = pnand %p701_p6, %p695_p3 }
  0x10   :  { %705 = shalt.err (!%p702_p7)
}
  0x11   :  { %s779_s22 = smov 64   ;;  %s780_s23 = smov 4  }
  0x12   :  { %34 = dma.hbm_to_vmem [thread:$0]  %s1171_s1, 512, %s29_s13, [#allocation6], %s779_s22, %s779_s22, %s780_s23  }
  0x13   :  { %s781_s26 = smov [#allocation2]   ;;  %s706_s30 = scalar_lea.hbm %s1170_s0, 1024 }
  0x14   :  { %s16_s27 = sshll.u32 %s781_s26, 4  ;;  %p707_p8 = scmp.ne.s32.totalorder %s1170_s0, %s706_s30  ;;  %s17_s27 = int_to_ptr.vmem [resolvable:$true] %s16_s27 }
  0x15   :  { %p710_p9 = scmp.lt.u32.totalorder %s706_s30, %s1170_s0 }
  0x17   :  { %p712_p10 = pnand %p710_p9, %p707_p8 }
  0x19   :  { %715 = shalt.err (!%p712_p10)
}
  0x1a   :  { %s716_s8 = scalar_lea.vmem %s17_s27, 1024  ;;  %p721_p12 = scmp.lt.s32.totalorder %s17_s27, %s17_s27 }
  0x1b   :  { %p717_p11 = scmp.ne.s32.totalorder %s17_s27, %s716_s8  ;;  %p722_p13 = scmp.lt.s32.totalorder %s716_s8, %s716_s8 }
  0x1d   :  { %p723_p0 = por %p722_p13, %p721_p12 }
  0x1f   :  { %p724_p1 = pnand %p723_p0, %p717_p11 }
  0x21   :  { %727 = shalt.err (!%p724_p1)
}
  0x22   :  { %s782_s1 = smov 128   ;;  %s783_s9 = smov 8  }
  0x23   :  { %22 = dma.hbm_to_vmem [thread:$0]  %s1170_s0, 1024, %s17_s27, [#allocation3], %s782_s1, %s782_s1, %s783_s9  }
  0x24   :  { %s784_s12 = smov [#allocation7]   ;;  %s728_s16 = scalar_lea.hbm %s1172_s2, 128 }
  0x25   :  { %s41_s13 = sshll.u32 %s784_s12, 4  ;;  %p729_p2 = scmp.ne.s32.totalorder %s1172_s2, %s728_s16  ;;  %s42_s13 = int_to_ptr.vmem [resolvable:$true] %s41_s13 }
  0x26   :  { %p732_p3 = scmp.lt.u32.totalorder %s728_s16, %s1172_s2 }
  0x28   :  { %p734_p4 = pnand %p732_p3, %p729_p2 }
  0x2a   :  { %737 = shalt.err (!%p734_p4)
}
  0x2b   :  { %s738_s21 = scalar_lea.vmem %s42_s13, 128  ;;  %p743_p6 = scmp.lt.s32.totalorder %s42_s13, %s42_s13 }
  0x2c   :  { %p739_p5 = scmp.ne.s32.totalorder %s42_s13, %s738_s21  ;;  %p744_p7 = scmp.lt.s32.totalorder %s738_s21, %s738_s21 }
  0x2e   :  { %p745_p8 = por %p744_p7, %p743_p6 }
  0x30   :  { %p746_p9 = pnand %p745_p8, %p739_p5 }
  0x32   :  { %749 = shalt.err (!%p746_p9)
}
  0x33   :  { %44 = dma.hbm_to_vmem [thread:$0]  %s1172_s2, 128, %s42_s13, [#allocation6]  }
  0x34   :  { %772 = dma.done.wait [#allocation3], 1024  }
  0x35   :  { %773 = vsyncadd [#allocation3], 4294966272 }
  0x36   :  { %774 = dma.done.wait [#allocation6], 640  }
  0x37   :  { %775 = vsyncadd [#allocation6], 4294966656  ;;  %v64_v0 = vlaneseq  ;;  %v55_v3 = vld [vmem:[#allocation5 + $0x4] sm:$0xf]  ;;  %v54_v4 = vld [vmem:[#allocation5] sm:$0xf] }
  0x38   :  { %v56_v8 = vld [vmem:[#allocation5 + $0x8] sm:$0xf]  ;;  %v57_v10 = vld [vmem:[#allocation5 + $0xc] sm:$0xf]  ;;  %v58_v12 = vld [vmem:[#allocation5 + $0x10] sm:$0xf] }
  0x39   :  { %v845_v1 = vshrl.u32 %v64_v0, 7  ;;  %v59_v13 = vld [vmem:[#allocation5 + $0x14] sm:$0xf]  ;;  %v60_v14 = vld [vmem:[#allocation5 + $0x18] sm:$0xf]  ;;  %v537_v50 = vld [vmem:[#allocation7] sm:$0xff] }
  0x3a   :  { %v61_v18 = vld [vmem:[#allocation5 + $0x1c] sm:$0xf]  ;;  %s785_s2 = smov [#allocation8]  }
  0x3b   :  { %v848_v2 = vsub.s32 0, %v845_v1  ;;  %v853_v7 = vsub.s32 2, %v845_v1  ;;  %v856_v9 = vsub.s32 3, %v845_v1  ;;  %v909_v37 = vsub.s32 1, %v845_v1  ;;  %s663_s23 = sshll.u32 %s785_s2, 4  ;;  %s664_s23 = int_to_ptr.vmem [resolvable:$true] %s663_s23 }
  0x3c   :  { %v584_v63 = vsub.s32 4, %v845_v1  ;;  %s750_s24 = scalar_lea.vmem %s664_s23, 2048  ;;  %p755_p11 = scmp.lt.s32.totalorder %s664_s23, %s664_s23 }
  0x3d   :  { %v78_v5 = vrot.slane %v55_v3, %v848_v2  ;;  %v67_v6 = vrot.slane %v54_v4, %v848_v2  ;;  %v89_v11 = vrot.slane %v56_v8, %v848_v2  ;;  %v297_v15 = vrot.slane %v54_v4, %v853_v7  ;;  %p751_p10 = scmp.ne.s32.totalorder %s664_s23, %s750_s24  ;;  %p756_p12 = scmp.lt.s32.totalorder %s750_s24, %s750_s24 }
  0x3e   :  { %v308_v16 = vrot.slane %v55_v3, %v853_v7  ;;  %v862_v17 = vrot.slane %v56_v8, %v853_v7  ;;  %v865_v19 = vrot.slane %v57_v10, %v853_v7  ;;  %v868_v20 = vrot.slane %v58_v12, %v853_v7 }
  0x3f   :  { %80 = vbcast.lane.b32.xlu1 %v78_v5, 256  ;;  %69 = vbcast.lane.b32.xlu0 %v67_v6, 256  ;;  %v871_v21 = vrot.slane %v59_v13, %v853_v7  ;;  %v874_v22 = vrot.slane %v60_v14, %v853_v7  ;;  %v877_v23 = vrot.slane %v61_v18, %v853_v7  ;;  %p757_p13 = por %p756_p12, %p755_p11 }
  0x40   :  { %v880_v24 = vrot.slane %v54_v4, %v856_v9  ;;  %v883_v25 = vrot.slane %v55_v3, %v856_v9  ;;  %v886_v26 = vrot.slane %v56_v8, %v856_v9  ;;  %v889_v27 = vrot.slane %v57_v10, %v856_v9 }
  0x41   :  { %v892_v28 = vrot.slane %v58_v12, %v856_v9  ;;  %v895_v29 = vrot.slane %v59_v13, %v856_v9  ;;  %v898_v30 = vrot.slane %v60_v14, %v856_v9  ;;  %v901_v31 = vrot.slane %v61_v18, %v856_v9  ;;  %p758_p0 = pnand %p757_p13, %p751_p10 }
  0x42   :  { %v100_v32 = vrot.slane %v57_v10, %v848_v2  ;;  %v111_v33 = vrot.slane %v58_v12, %v848_v2  ;;  %v122_v34 = vrot.slane %v59_v13, %v848_v2  ;;  %v133_v35 = vrot.slane %v60_v14, %v848_v2 }
  0x43   :  { %84 = vbcast.lane.b32.xlu1 %v78_v5, 264  ;;  %73 = vbcast.lane.b32.xlu0 %v67_v6, 264  ;;  %v144_v36 = vrot.slane %v61_v18, %v848_v2  ;;  %v174_v38 = vrot.slane %v54_v4, %v909_v37  ;;  %v185_v39 = vrot.slane %v55_v3, %v909_v37  ;;  %v595_v4 = vsub.s32 5, %v845_v1 }
  0x44   :  { %v196_v40 = vrot.slane %v56_v8, %v909_v37  ;;  %v207_v41 = vrot.slane %v57_v10, %v909_v37  ;;  %v218_v42 = vrot.slane %v58_v12, %v909_v37  ;;  %v229_v43 = vrot.slane %v59_v13, %v909_v37  ;;  %v975_v8 = vld [vmem:[#allocation2 + $0x8] sm:$0xff]  ;;  %v979_v10 = vld [vmem:[#allocation2 + $0x10] sm:$0xff] }
  0x45   :  { %v240_v44 = vrot.slane %v60_v14, %v909_v37  ;;  %v251_v45 = vrot.slane %v61_v18, %v909_v37  ;;  %v541_v53 = vrot.slane %v537_v50, %v848_v2  ;;  %v552_v56 = vrot.slane %v537_v50, %v909_v37 }
  0x46   :  { %v563_v59 = vrot.slane %v537_v50, %v853_v7  ;;  %v574_v62 = vrot.slane %v537_v50, %v856_v9  ;;  %v585_v3 = vrot.slane %v537_v50, %v584_v63  ;;  %v973_v7 = vld [vmem:[#allocation2] sm:$0xff]  ;;  %v977_v9 = vld [vmem:[#allocation2 + $0x18] sm:$0xff]  ;;  %v606_v12 = vsub.s32 6, %v845_v1 }
  0x47   :  { %95 = vbcast.lane.b32.xlu1 %v89_v11, 264  ;;  %91 = vbcast.lane.b32.xlu0 %v89_v11, 256  ;;  %v596_v11 = vrot.slane %v537_v50, %v595_v4 }
  0x4b   :  { %106 = vbcast.lane.b32.xlu1 %v100_v32, 264  ;;  %102 = vbcast.lane.b32.xlu0 %v100_v32, 256 }
  0x4f   :  { %117 = vbcast.lane.b32.xlu1 %v111_v33, 264  ;;  %113 = vbcast.lane.b32.xlu0 %v111_v33, 256 }
  0x53   :  { %128 = vbcast.lane.b32.xlu1 %v122_v34, 264  ;;  %124 = vbcast.lane.b32.xlu0 %v122_v34, 256 }
  0x57   :  { %139 = vbcast.lane.b32.xlu1 %v133_v35, 264  ;;  %135 = vbcast.lane.b32.xlu0 %v133_v35, 256 }
  0x5b   :  { %150 = vbcast.lane.b32.xlu1 %v144_v36, 264  ;;  %146 = vbcast.lane.b32.xlu0 %v144_v36, 256 }
  0x5f   :  { %180 = vbcast.lane.b32.xlu1 %v174_v38, 264  ;;  %176 = vbcast.lane.b32.xlu0 %v174_v38, 256 }
  0x63   :  { %191 = vbcast.lane.b32.xlu1 %v185_v39, 264  ;;  %187 = vbcast.lane.b32.xlu0 %v185_v39, 256 }
  0x67   :  { %202 = vbcast.lane.b32.xlu1 %v196_v40, 264  ;;  %198 = vbcast.lane.b32.xlu0 %v196_v40, 256 }
  0x6b   :  { %213 = vbcast.lane.b32.xlu1 %v207_v41, 264  ;;  %209 = vbcast.lane.b32.xlu0 %v207_v41, 256 }
  0x6f   :  { %224 = vbcast.lane.b32.xlu1 %v218_v42, 264  ;;  %220 = vbcast.lane.b32.xlu0 %v218_v42, 256 }
  0x73   :  { %235 = vbcast.lane.b32.xlu1 %v229_v43, 264  ;;  %231 = vbcast.lane.b32.xlu0 %v229_v43, 256 }
  0x77   :  { %246 = vbcast.lane.b32.xlu1 %v240_v44, 264  ;;  %242 = vbcast.lane.b32.xlu0 %v240_v44, 256 }
  0x7b   :  { %257 = vbcast.lane.b32.xlu1 %v251_v45, 264  ;;  %253 = vbcast.lane.b32.xlu0 %v251_v45, 256 }
  0x7f   :  { %303 = vbcast.lane.b32.xlu1 %v297_v15, 264  ;;  %299 = vbcast.lane.b32.xlu0 %v297_v15, 256 }
  0x83   :  { %314 = vbcast.lane.b32.xlu1 %v308_v16, 264  ;;  %310 = vbcast.lane.b32.xlu0 %v308_v16, 256 }
  0x87   :  { %325 = vbcast.lane.b32.xlu1 %v862_v17, 264  ;;  %321 = vbcast.lane.b32.xlu0 %v862_v17, 256 }
  0x8b   :  { %336 = vbcast.lane.b32.xlu1 %v865_v19, 264  ;;  %332 = vbcast.lane.b32.xlu0 %v865_v19, 256  ;;  %v607_v19 = vrot.slane %v537_v50, %v606_v12 }
  0x8f   :  { %347 = vbcast.lane.b32.xlu1 %v868_v20, 264  ;;  %343 = vbcast.lane.b32.xlu0 %v868_v20, 256  ;;  %v617_v20 = vsub.s32 7, %v845_v1 }
  0x93   :  { %358 = vbcast.lane.b32.xlu1 %v871_v21, 264  ;;  %354 = vbcast.lane.b32.xlu0 %v871_v21, 256 }
  0x97   :  { %369 = vbcast.lane.b32.xlu1 %v874_v22, 264  ;;  %365 = vbcast.lane.b32.xlu0 %v874_v22, 256 }
  0x9b   :  { %380 = vbcast.lane.b32.xlu1 %v877_v23, 264  ;;  %376 = vbcast.lane.b32.xlu0 %v877_v23, 256 }
  0x9f   :  { %426 = vbcast.lane.b32.xlu1 %v880_v24, 264  ;;  %422 = vbcast.lane.b32.xlu0 %v880_v24, 256 }
  0xa3   :  { %437 = vbcast.lane.b32.xlu1 %v883_v25, 264  ;;  %433 = vbcast.lane.b32.xlu0 %v883_v25, 256 }
  0xa7   :  { %448 = vbcast.lane.b32.xlu1 %v886_v26, 264  ;;  %444 = vbcast.lane.b32.xlu0 %v886_v26, 256 }
  0xab   :  { %459 = vbcast.lane.b32.xlu1 %v889_v27, 264  ;;  %455 = vbcast.lane.b32.xlu0 %v889_v27, 256 }
  0xaf   :  { %470 = vbcast.lane.b32.xlu1 %v892_v28, 264  ;;  %466 = vbcast.lane.b32.xlu0 %v892_v28, 256 }
  0xb1   :  { %v81_v46 = vpop.permute.xlu1 %80  ;;  %v70_v47 = vpop.permute.xlu0 %69 }
  0xb2   :  { %v152_v15 = vmul.f32 %v70_v47, %v973_v7  ;;  %v154_v25 = vmul.f32 %v81_v46, %v973_v7 }
  0xb3   :  { %481 = vbcast.lane.b32.xlu1 %v895_v29, 264  ;;  %477 = vbcast.lane.b32.xlu0 %v895_v29, 256  ;;  %v618_v29 = vrot.slane %v537_v50, %v617_v20 }
  0xb5   :  { %v85_v48 = vpop.permute.xlu1 %84  ;;  %v74_v49 = vpop.permute.xlu0 %73 }
  0xb6   :  { %v153_v16 = vmul.f32 %v74_v49, %v975_v8  ;;  %v155_v26 = vmul.f32 %v85_v48, %v975_v8 }
  0xb7   :  { %492 = vbcast.lane.b32.xlu1 %v898_v30, 264  ;;  %488 = vbcast.lane.b32.xlu0 %v898_v30, 256 }
  0xb9   :  { %v96_v51 = vpop.permute.xlu1 %95  ;;  %v92_v52 = vpop.permute.xlu0 %91 }
  0xba   :  { %v157_v33 = vmul.f32 %v96_v51, %v975_v8  ;;  %v156_v34 = vmul.f32 %v92_v52, %v973_v7 }
  0xbb   :  { %503 = vbcast.lane.b32.xlu1 %v901_v31, 264  ;;  %499 = vbcast.lane.b32.xlu0 %v901_v31, 256 }
  0xbd   :  { %v948_v54 = vpop.permute.xlu1 %106  ;;  %v950_v55 = vpop.permute.xlu0 %102 }
  0xbe   :  { %v159_v41 = vmul.f32 %v948_v54, %v975_v8  ;;  %v158_v42 = vmul.f32 %v950_v55, %v973_v7 }
  0xbf   :  { %547 = vbcast.lane.b32.xlu1 %v541_v53, 264  ;;  %543 = vbcast.lane.b32.xlu0 %v541_v53, 256 }
  0xc1   :  { %v953_v57 = vpop.permute.xlu1 %117  ;;  %v955_v58 = vpop.permute.xlu0 %113 }
  0xc2   :  { %v161_v49 = vmul.f32 %v953_v57, %v975_v8  ;;  %v160_v50 = vmul.f32 %v955_v58, %v973_v7 }
  0xc3   :  { %558 = vbcast.lane.b32.xlu1 %v552_v56, 264  ;;  %554 = vbcast.lane.b32.xlu0 %v552_v56, 256 }
  0xc5   :  { %v958_v60 = vpop.permute.xlu1 %128  ;;  %v960_v61 = vpop.permute.xlu0 %124 }
  0xc7   :  { %569 = vbcast.lane.b32.xlu1 %v563_v59, 264  ;;  %565 = vbcast.lane.b32.xlu0 %v563_v59, 256  ;;  %v163_v59 = vmul.f32 %v958_v60, %v975_v8 }
  0xc9   :  { %v964_v0 = vpop.permute.xlu1 %139  ;;  %v966_v2 = vpop.permute.xlu0 %135 }
  0xca   :  { %v165_v12 = vmul.f32 %v964_v0, %v975_v8 }
  0xcb   :  { %580 = vbcast.lane.b32.xlu1 %v574_v62, 264  ;;  %576 = vbcast.lane.b32.xlu0 %v574_v62, 256  ;;  %v162_v62 = vmul.f32 %v960_v61, %v973_v7 }
  0xcd   :  { %v969_v5 = vpop.permute.xlu1 %150  ;;  %v971_v6 = vpop.permute.xlu0 %146 }
  0xcf   :  { %591 = vbcast.lane.b32.xlu1 %v585_v3, 264  ;;  %587 = vbcast.lane.b32.xlu0 %v585_v3, 256 }
  0xd1   :  { %v181_v13 = vpop.permute.xlu1 %180  ;;  %v177_v14 = vpop.permute.xlu0 %176 }
  0xd2   :  { %v260_v17 = vmul.f32 %v181_v13, %v977_v9  ;;  %v259_v18 = vmul.f32 %v177_v14, %v979_v10  ;;  %v164_v13 = vmul.f32 %v966_v2, %v973_v7 }
  0xd3   :  { %602 = vbcast.lane.b32.xlu1 %v596_v11, 264  ;;  %598 = vbcast.lane.b32.xlu0 %v596_v11, 256 }
  0xd4   :  { %v987_v21 = vadd.f32 %v260_v17, %v153_v16  ;;  %v989_v22 = vadd.f32 %v259_v18, %v152_v15  ;;  %v167_v18 = vmul.f32 %v969_v5, %v975_v8 }
  0xd5   :  { %v192_v23 = vpop.permute.xlu1 %191  ;;  %v188_v24 = vpop.permute.xlu0 %187 }
  0xd6   :  { %v262_v27 = vmul.f32 %v192_v23, %v977_v9  ;;  %v261_v28 = vmul.f32 %v188_v24, %v979_v10 }
  0xd7   :  { %613 = vbcast.lane.b32.xlu1 %v607_v19, 264  ;;  %609 = vbcast.lane.b32.xlu0 %v607_v19, 256  ;;  %v166_v19 = vmul.f32 %v971_v6, %v973_v7 }
  0xd8   :  { %v995_v30 = vadd.f32 %v262_v27, %v155_v26  ;;  %v997_v1 = vadd.f32 %v261_v28, %v154_v25 }
  0xd9   :  { %v203_v31 = vpop.permute.xlu1 %202  ;;  %v199_v32 = vpop.permute.xlu0 %198 }
  0xda   :  { %v264_v35 = vmul.f32 %v203_v31, %v977_v9  ;;  %v263_v36 = vmul.f32 %v199_v32, %v979_v10 }
  0xdb   :  { %624 = vbcast.lane.b32.xlu1 %v618_v29, 264  ;;  %620 = vbcast.lane.b32.xlu0 %v618_v29, 256 }
  0xdc   :  { %v1003_v37 = vadd.f32 %v264_v35, %v157_v33  ;;  %v1005_v38 = vadd.f32 %v263_v36, %v156_v34 }
  0xdd   :  { %v214_v39 = vpop.permute.xlu1 %213  ;;  %v210_v40 = vpop.permute.xlu0 %209 }
  0xde   :  { %v266_v43 = vmul.f32 %v214_v39, %v977_v9  ;;  %v265_v44 = vmul.f32 %v210_v40, %v979_v10 }
  0xe0   :  { %v1013_v45 = vadd.f32 %v266_v43, %v159_v41  ;;  %v1015_v46 = vadd.f32 %v265_v44, %v158_v42 }
  0xe1   :  { %v225_v47 = vpop.permute.xlu1 %224  ;;  %v221_v48 = vpop.permute.xlu0 %220 }
  0xe2   :  { %v268_v51 = vmul.f32 %v225_v47, %v977_v9  ;;  %v267_v52 = vmul.f32 %v221_v48, %v979_v10 }
  0xe4   :  { %v1023_v53 = vadd.f32 %v268_v51, %v161_v49  ;;  %v1025_v54 = vadd.f32 %v267_v52, %v160_v50  ;;  %v1077_v51 = vld [vmem:[#allocation2 + $0x28] sm:$0xff]  ;;  %v1079_v52 = vld [vmem:[#allocation2 + $0x20] sm:$0xff] }
  0xe5   :  { %v236_v55 = vpop.permute.xlu1 %235  ;;  %v232_v56 = vpop.permute.xlu0 %231 }
  0xe6   :  { %v270_v57 = vmul.f32 %v236_v55, %v977_v9  ;;  %v269_v58 = vmul.f32 %v232_v56, %v979_v10  ;;  %v1081_v55 = vld [vmem:[#allocation2 + $0x38] sm:$0xff]  ;;  %v1083_v56 = vld [vmem:[#allocation2 + $0x30] sm:$0xff] }
  0xe8   :  { %v1033_v63 = vadd.f32 %v270_v57, %v163_v59  ;;  %v1035_v3 = vadd.f32 %v269_v58, %v162_v62 }
  0xe9   :  { %v247_v4 = vpop.permute.xlu1 %246  ;;  %v243_v11 = vpop.permute.xlu0 %242 }
  0xea   :  { %v272_v60 = vmul.f32 %v247_v4, %v977_v9  ;;  %v271_v61 = vmul.f32 %v243_v11, %v979_v10 }
  0xec   :  { %v1043_v14 = vadd.f32 %v272_v60, %v165_v12  ;;  %v1045_v15 = vadd.f32 %v271_v61, %v164_v13 }
  0xed   :  { %v258_v16 = vpop.permute.xlu1 %257  ;;  %v254_v17 = vpop.permute.xlu0 %253 }
  0xee   :  { %v274_v0 = vmul.f32 %v258_v16, %v977_v9  ;;  %v273_v2 = vmul.f32 %v254_v17, %v979_v10 }
  0xf0   :  { %v1053_v20 = vadd.f32 %v274_v0, %v167_v18  ;;  %v1055_v23 = vadd.f32 %v273_v2, %v166_v19 }
  0xf1   :  { %v304_v24 = vpop.permute.xlu1 %303  ;;  %v300_v25 = vpop.permute.xlu0 %299 }
  0xf2   :  { %v383_v57 = vmul.f32 %v304_v24, %v1077_v51  ;;  %v382_v58 = vmul.f32 %v300_v25, %v1079_v52 }
  0xf4   :  { %v399_v60 = vadd.f32 %v383_v57, %v987_v21  ;;  %v398_v61 = vadd.f32 %v382_v58, %v989_v22 }
  0xf5   :  { %v315_v26 = vpop.permute.xlu1 %314  ;;  %v311_v27 = vpop.permute.xlu0 %310 }
  0xf6   :  { %v385_v16 = vmul.f32 %v315_v26, %v1077_v51  ;;  %v384_v17 = vmul.f32 %v311_v27, %v1079_v52 }
  0xf8   :  { %v401_v21 = vadd.f32 %v385_v16, %v995_v30  ;;  %v400_v22 = vadd.f32 %v384_v17, %v997_v1 }
  0xf9   :  { %v326_v28 = vpop.permute.xlu1 %325  ;;  %v322_v29 = vpop.permute.xlu0 %321 }
  0xfa   :  { %v387_v24 = vmul.f32 %v326_v28, %v1077_v51  ;;  %v386_v25 = vmul.f32 %v322_v29, %v1079_v52 }
  0xfc   :  { %v403_v28 = vadd.f32 %v387_v24, %v1003_v37  ;;  %v402_v29 = vadd.f32 %v386_v25, %v1005_v38 }
  0xfd   :  { %v337_v31 = vpop.permute.xlu1 %336  ;;  %v333_v32 = vpop.permute.xlu0 %332 }
  0xfe   :  { %v389_v30 = vmul.f32 %v337_v31, %v1077_v51  ;;  %v388_v1 = vmul.f32 %v333_v32, %v1079_v52 }
 0x100   :  { %v405_v32 = vadd.f32 %v389_v30, %v1013_v45 }
 0x101   :  { %v1057_v5 = vpop.permute.xlu1 %347  ;;  %v1059_v8 = vpop.permute.xlu0 %343 }
 0x102   :  { %v391_v37 = vmul.f32 %v1057_v5, %v1077_v51  ;;  %v390_v38 = vmul.f32 %v1059_v8, %v1079_v52 }
 0x104   :  { %v407_v5 = vadd.f32 %v391_v37, %v1023_v53  ;;  %v406_v8 = vadd.f32 %v390_v38, %v1025_v54 }
 0x105   :  { %v1061_v6 = vpop.permute.xlu1 %358  ;;  %v1063_v7 = vpop.permute.xlu0 %354 }
 0x106   :  { %v393_v45 = vmul.f32 %v1061_v6, %v1077_v51 }
 0x109   :  { %v1065_v9 = vpop.permute.xlu1 %369  ;;  %v1067_v10 = vpop.permute.xlu0 %365 }
 0x10a   :  { %v394_v6 = vmul.f32 %v1067_v10, %v1079_v52 }
 0x10d   :  { %v1069_v33 = vpop.permute.xlu1 %380  ;;  %v1071_v34 = vpop.permute.xlu0 %376 }
 0x111   :  { %v427_v35 = vpop.permute.xlu1 %426  ;;  %v423_v36 = vpop.permute.xlu0 %422 }
 0x112   :  { %v506_v4 = vmul.f32 %v427_v35, %v1081_v55  ;;  %v505_v11 = vmul.f32 %v423_v36, %v1083_v56 }
 0x114   :  { %v522_v0 = vadd.f32 %v506_v4, %v399_v60  ;;  %v521_v2 = vadd.f32 %v505_v11, %v398_v61 }
 0x115   :  { %v438_v39 = vpop.permute.xlu1 %437  ;;  %v434_v40 = vpop.permute.xlu0 %433 }
 0x116   :  { %v508_v18 = vmul.f32 %v438_v39, %v1081_v55  ;;  %v507_v19 = vmul.f32 %v434_v40, %v1083_v56 }
 0x118   :  { %v524_v40 = vadd.f32 %v508_v18, %v401_v21  ;;  %v523_v58 = vadd.f32 %v507_v19, %v400_v22  ;;  %v404_v19 = vadd.f32 %v388_v1, %v1015_v46  ;;  %v392_v46 = vmul.f32 %v1063_v7, %v1079_v52 }
 0x119   :  { %v449_v41 = vpop.permute.xlu1 %448  ;;  %v445_v42 = vpop.permute.xlu0 %444 }
 0x11a   :  { %v510_v27 = vmul.f32 %v449_v41, %v1081_v55  ;;  %v509_v39 = vmul.f32 %v445_v42, %v1083_v56 }
 0x11c   :  { %v526_v16 = vadd.f32 %v510_v27, %v403_v28  ;;  %v525_v17 = vadd.f32 %v509_v39, %v402_v29  ;;  %v409_v27 = vadd.f32 %v393_v45, %v1033_v63  ;;  %v408_v39 = vadd.f32 %v392_v46, %v1035_v3 }
 0x11d   :  { %v460_v43 = vpop.permute.xlu1 %459  ;;  %v456_v44 = vpop.permute.xlu0 %455  ;;  %v410_v29 = vadd.f32 %v394_v6, %v1045_v15  ;;  %v397_v3 = vmul.f32 %v1069_v33, %v1077_v51 }
 0x11e   :  { %v512_v41 = vmul.f32 %v460_v43, %v1081_v55  ;;  %v511_v42 = vmul.f32 %v456_v44, %v1083_v56 }
 0x120   :  { %v528_v24 = vadd.f32 %v512_v41, %v405_v32  ;;  %v527_v25 = vadd.f32 %v511_v42, %v404_v19  ;;  %v413_v41 = vadd.f32 %v397_v3, %v1053_v20 }
 0x121   :  { %v471_v47 = vpop.permute.xlu1 %470  ;;  %v467_v48 = vpop.permute.xlu0 %466 }
 0x122   :  { %v514_v44 = vmul.f32 %v471_v47, %v1081_v55 }
 0x124   :  { %v530_v53 = vadd.f32 %v514_v44, %v407_v5 }
 0x125   :  { %v1073_v49 = vpop.permute.xlu1 %481  ;;  %v1075_v50 = vpop.permute.xlu0 %477 }
 0x126   :  { %v515_v22 = vmul.f32 %v1075_v50, %v1083_v56 }
 0x128   :  { %v531_v28 = vadd.f32 %v515_v22, %v408_v39 }
 0x129   :  { %v1085_v59 = vpop.permute.xlu1 %492  ;;  %v1087_v62 = vpop.permute.xlu0 %488 }
 0x12a   :  { %v518_v50 = vmul.f32 %v1085_v59, %v1081_v55 }
 0x12d   :  { %v1093_v12 = vpop.permute.xlu1 %503  ;;  %v1095_v13 = vpop.permute.xlu0 %499 }
 0x12e   :  { %v519_v1 = vmul.f32 %v1095_v13, %v1083_v56 }
 0x131   :  { %v548_v35 = vpop.permute.xlu1 %547  ;;  %v544_v36 = vpop.permute.xlu0 %543 }
 0x132   :  { %v627_v57 = vadd.f32 %v548_v35, %v522_v0  ;;  %v626_v26 = vadd.f32 %v544_v36, %v521_v2  ;;  %v513_v2 = vmul.f32 %v467_v48, %v1083_v56  ;;  %v516_v48 = vmul.f32 %v1073_v49, %v1081_v55 }
 0x134   :  { %643 = vst [vmem:[#allocation8 + $0x8] sm:$0xff] %v627_v57  ;;  %642 = vst [vmem:[#allocation8] sm:$0xff] %v626_v26  ;;  %v529_v54 = vadd.f32 %v513_v2, %v406_v8  ;;  %v395_v57 = vmul.f32 %v1065_v9, %v1077_v51  ;;  %v532_v9 = vadd.f32 %v516_v48, %v409_v27 }
 0x135   :  { %v559_v4 = vpop.permute.xlu1 %558  ;;  %v555_v11 = vpop.permute.xlu0 %554 }
 0x136   :  { %v629_v60 = vadd.f32 %v559_v4, %v524_v40  ;;  %v628_v61 = vadd.f32 %v555_v11, %v523_v58  ;;  %v517_v58 = vmul.f32 %v1087_v62, %v1083_v56  ;;  %v411_v10 = vadd.f32 %v395_v57, %v1043_v14 }
 0x137   :  { %v396_v11 = vmul.f32 %v1071_v34, %v1079_v52  ;;  %v520_v62 = vmul.f32 %v1093_v12, %v1081_v55 }
 0x138   :  { %645 = vst [vmem:[#allocation8 + $0x18] sm:$0xff] %v629_v60  ;;  %644 = vst [vmem:[#allocation8 + $0x10] sm:$0xff] %v628_v61  ;;  %v534_v14 = vadd.f32 %v518_v50, %v411_v10  ;;  %v533_v15 = vadd.f32 %v517_v58, %v410_v29 }
 0x139   :  { %v570_v18 = vpop.permute.xlu1 %569  ;;  %v566_v31 = vpop.permute.xlu0 %565  ;;  %v412_v33 = vadd.f32 %v396_v11, %v1055_v23  ;;  %v536_v52 = vadd.f32 %v520_v62, %v413_v41 }
 0x13a   :  { %v631_v0 = vadd.f32 %v570_v18, %v526_v16  ;;  %v630_v43 = vadd.f32 %v566_v31, %v525_v17 }
 0x13b   :  { %v535_v55 = vadd.f32 %v519_v1, %v412_v33 }
 0x13c   :  { %647 = vst [vmem:[#allocation8 + $0x28] sm:$0xff] %v631_v0  ;;  %646 = vst [vmem:[#allocation8 + $0x20] sm:$0xff] %v630_v43 }
 0x13d   :  { %v581_v35 = vpop.permute.xlu1 %580  ;;  %v577_v36 = vpop.permute.xlu0 %576 }
 0x13e   :  { %v633_v21 = vadd.f32 %v581_v35, %v528_v24  ;;  %v632_v47 = vadd.f32 %v577_v36, %v527_v25 }
 0x140   :  { %649 = vst [vmem:[#allocation8 + $0x38] sm:$0xff] %v633_v21  ;;  %648 = vst [vmem:[#allocation8 + $0x30] sm:$0xff] %v632_v47 }
 0x141   :  { %v592_v26 = vpop.permute.xlu1 %591  ;;  %v588_v7 = vpop.permute.xlu0 %587 }
 0x142   :  { %v635_v49 = vadd.f32 %v592_v26, %v530_v53  ;;  %v634_v40 = vadd.f32 %v588_v7, %v529_v54 }
 0x144   :  { %651 = vst [vmem:[#allocation8 + $0x48] sm:$0xff] %v635_v49  ;;  %650 = vst [vmem:[#allocation8 + $0x40] sm:$0xff] %v634_v40 }
 0x145   :  { %v603_v4 = vpop.permute.xlu1 %602  ;;  %v599_v63 = vpop.permute.xlu0 %598 }
 0x146   :  { %v637_v59 = vadd.f32 %v603_v4, %v532_v9  ;;  %v636_v30 = vadd.f32 %v599_v63, %v531_v28 }
 0x148   :  { %653 = vst [vmem:[#allocation8 + $0x58] sm:$0xff] %v637_v59  ;;  %652 = vst [vmem:[#allocation8 + $0x50] sm:$0xff] %v636_v30 }
 0x149   :  { %v614_v60 = vpop.permute.xlu1 %613  ;;  %v610_v61 = vpop.permute.xlu0 %609 }
 0x14a   :  { %v639_v51 = vadd.f32 %v614_v60, %v534_v14  ;;  %v638_v34 = vadd.f32 %v610_v61, %v533_v15 }
 0x14c   :  { %655 = vst [vmem:[#allocation8 + $0x68] sm:$0xff] %v639_v51  ;;  %654 = vst [vmem:[#allocation8 + $0x60] sm:$0xff] %v638_v34 }
 0x14d   :  { %v625_v12 = vpop.permute.xlu1 %624  ;;  %v621_v56 = vpop.permute.xlu0 %620 }
 0x14e   :  { %v641_v13 = vadd.f32 %v625_v12, %v536_v52  ;;  %v640_v42 = vadd.f32 %v621_v56, %v535_v55 }
 0x150   :  { %657 = vst [vmem:[#allocation8 + $0x78] sm:$0xff] %v641_v13  ;;  %656 = vst [vmem:[#allocation8 + $0x70] sm:$0xff] %v640_v42 }
 0x151   :  { %761 = shalt.err (!%p758_p0)
}
 0x152   :  { %s762_s27 = scalar_lea.hbm %s1173_s3, 2048 }
 0x153   :  { %p763_p1 = scmp.ne.s32.totalorder %s1173_s3, %s762_s27  ;;  %p766_p2 = scmp.lt.u32.totalorder %s762_s27, %s1173_s3 }
 0x155   :  { %p768_p3 = pnand %p766_p2, %p763_p1 }
 0x157   :  { %771 = shalt.err (!%p768_p3)
}
 0x158   :  { %669 = dma.vmem_to_hbm [thread:$0]  %s664_s23, 2048, %s1173_s3, [#allocation4], %s782_s1, %s782_s1, %s783_s9  }
 0x159   :  { %776 = dma.done.wait [#allocation4], 2048  }
 0x15a   :  { %777 = vsyncadd [#allocation4], 4294965248 }
 0x15b   :  { %673 = vsyncpa [#allocation3], 1 }
 0x15c   :  { %674 = vsyncpa [#allocation6], 1 }
 0x15d   :  { %675 = vsyncpa [#allocation4], 1 }

</bundles_post_ra>
